<compile_context>
chip_gen: v7x
topology: tpu7x:2x2x1
jax: 0.10.0
libtpu: 0.0.40
codegen_flags: <defaults>
</compile_context>

<pallas_src>
import jax
import jax.numpy as jnp
from jax.experimental import pallas as pl
from jax.experimental.pallas import tpu as pltpu

MA_KERNELS = (3, 5, 9)                    # assumed TMPQ moving-average windows
_PAD = (MA_KERNELS[-1] - 1) // 2          # 4: replicate halo for the widest MA


def tmp_embed_kernel(lens_ref, xp_ref, wbd_ref, lvl_ref, o_ref):
    """One grid step == (one TimeMixer scale, one batch tile).

    lens_ref: (num_scales,) SMEM  true (unpadded) sequence length per scale
    xp_ref  : (Bt, C, Tmax+2P)    channel-major input, TIME ON LANES,
                                  replicate-padded by P on both ends
                                  (and edge-padded T -> Tmax in between)
    wbd_ref : (12C, 4D) bf16      block-diagonal TokenEmbedding weight
    lvl_ref : (1, 4D)   f32       flattened level embedding [lvl0|lvl1|lvl2|lvl3]
    o_ref   : (Bt, Tmax, 4D)      concat(trend, s1, s2, s3) embeddings
    """
    T = lens_ref[pl.program_id(0)]               # valid length of this scale
    xp = xp_ref[...].astype(jnp.float32)         # f32 VPU math (v5e-safe)
    w = wbd_ref[...]                             # (12C, 4D) bf16
    lvl = lvl_ref[...]                           # (1, 4D)  f32
    Bt, C, Tp = xp.shape
    P = _PAD
    Tmax = Tp - 2 * P

    def sh(v):
        # x[t+v] with replicate clamping, as a STATIC lane slice of the halo'd buffer.
        return xp[:, :, P + v:P + v + Tmax]

    # TMPQ decomposition computed ONCE, sharing partial window sums.
    x0 = sh(0)
    sum3 = sh(-1) + x0 + sh(1)
    sum5 = sum3 + sh(-2) + sh(2)
    sum9 = sum5 + sh(-3) + sh(3) + sh(-4) + sh(4)
    m1 = sum3 * (1.0 / 3.0)
    m2 = sum5 * (1.0 / 5.0)
    m3 = sum9 * (1.0 / 9.0)
    comps = (m3, m2 - m3, m1 - m2, x0 - m1)      # trend, seasonal_1..3

    # Circular-conv taps: prev/next are 1-lane circular shifts of the SAME
    # decomposition (one lane rotate each).  Only t=0 (prev) and t=T-1 (next)
    # need the dynamic wrap fix; rows >= T are discarded by the wrapper.
    t_iota = jax.lax.broadcasted_iota(jnp.int32, (1, 1, Tmax), 2)
    is_first = t_iota == 0
    is_last = t_iota == T - 1

    taps = []
    for comp in comps:
        prev = jnp.roll(comp, 1, axis=2)         # comp[t-1]   (lane rotate)
        nxt = jnp.roll(comp, -1, axis=2)         # comp[t+1]   (lane rotate)
        c_first = comp[:, :, 0:1]                # comp[0] (static)
        # comp[T-1]: one masked lane reduce (T is dynamic; cheap in this layout).
        c_last = jnp.sum(jnp.where(is_last, comp, 0.0), axis=2, keepdims=True)
        taps.append(jnp.where(is_first, c_last, prev))   # x[(t-1) mod T]
        taps.append(comp)                                 # x[t]
        taps.append(jnp.where(is_last, c_first, nxt))    # x[(t+1) mod T]

    # Sublane concat (12 groups of C channels) -> (Bt, 12C, Tmax).
    stacked = jnp.concatenate(taps, axis=1)

    # Per batch row: one 2-D transpose to a lane-dense (Tmax, 12C) MXU operand,
    # one bf16 matmul against the block-diagonal weight (emits the four component
    # embeddings already concatenated on the lane axis), add level embed, store.
    for b in range(Bt):
        big_b = stacked[b].T.astype(jnp.bfloat16)              # (Tmax, 12C)
        y_b = jax.lax.dot_general(
            big_b, w, (((1,), (0,)), ((), ())),
            preferred_element_type=jnp.float32)                # (Tmax, 4D) f32 acc
        o_ref[b, :, :] = (y_b + lvl).astype(o_ref.dtype)


def prepare_token_embedding_params(conv_weights, level_embed):
    """One-time parameter prep (review: don't re-run kron/stack per call).

    conv_weights: 4 arrays [3C, D] -- circular-conv taps stacked [t-1, t, t+1] on
                  the contraction axis (PyTorch Conv1d weight [D, C, 3] reordered).
    level_embed : [4, D].
    Returns (wbd [4, 12C, 4D] bf16 block-diagonal weight, lvl [1, 4D] f32).
    """
    eye4 = jnp.eye(4, dtype=jnp.float32)
    wbd = jnp.stack(
        [jnp.kron(eye4, w.astype(jnp.float32)) for w in conv_weights],
        axis=0).astype(jnp.bfloat16)
    D = conv_weights[0].shape[-1]
    lvl = level_embed.astype(jnp.float32).reshape(1, 4 * D)
    return wbd, lvl


def _pick_batch_tile(B, max_bt=8):
    bt = min(B, max_bt)
    while B % bt:
        bt -= 1
    return bt


def tmp_timemixer_embedding(x_list, wbd, lvl_flat, *, out_dtype=jnp.bfloat16):
    """x_list: 4 arrays [B, T_i, C]. Returns list of [B, T_i, 4D] (out_dtype)."""
    n = len(x_list)
    B, _, C = x_list[0].shape
    fourD = lvl_flat.shape[-1]
    Ts = tuple(int(x.shape[1]) for x in x_list)
    Tmax = -(-max(Ts) // 8) * 8            # round up to a sublane multiple
    P = _PAD
    Bt = _pick_batch_tile(B)
    assert wbd.shape == (n, 12 * C, fourD), (wbd.shape, (n, 12 * C, fourD))

    # Channel-major (time-on-lanes) stacked input (n, B, C, Tmax + 2P):
    # replicate halo of P on both ends + edge-pad T -> Tmax, so every clamped
    # moving-average read inside the kernel is a plain static lane slice.
    xs = []
    for x in x_list:
        xt = jnp.swapaxes(x.astype(jnp.float32), 1, 2)                   # (B, C, T)
        xt = jnp.pad(xt, ((0, 0), (0, 0), (P, P + Tmax - x.shape[1])), mode="edge")
        xs.append(xt)
    x_stacked = jnp.stack(xs, axis=0)

    lens = jnp.asarray(Ts, dtype=jnp.int32)

    out = pl.pallas_call(
        tmp_embed_kernel,
        out_shape=jax.ShapeDtypeStruct((n, B, Tmax, fourD), out_dtype),
        grid_spec=pltpu.PrefetchScalarGridSpec(
            num_scalar_prefetch=1,
            grid=(n, B // Bt),                      # (scale, batch-tile); batch fastest
            in_specs=[
                pl.BlockSpec((None, Bt, C, Tmax + 2 * P),
                             lambda i, b, lens_smem: (i, b, 0, 0)),
                pl.BlockSpec((None, 12 * C, fourD),
                             lambda i, b, lens_smem: (i, 0, 0)),
                pl.BlockSpec((1, fourD), lambda i, b, lens_smem: (0, 0)),
            ],
            out_specs=pl.BlockSpec((None, Bt, Tmax, fourD),
                                   lambda i, b, lens_smem: (i, b, 0, 0)),
        ),
        compiler_params=pltpu.CompilerParams(
            # Both grid axes are independent -> shard across v7x's 2 TensorCores.
            dimension_semantics=("parallel", "parallel"),
            # Per-step working set is small; 32 MiB bounds it on v5e/v6e/v7x alike.
            vmem_limit_bytes=32 * 1024 * 1024),
    )(lens, x_stacked, wbd, lvl_flat)

    # Module semantics: list of per-scale [B, T_i, 4D].  If the consumer can take
    # the stacked padded tensor, return `out` directly and skip this extra HBM pass.
    return [out[i, :, :t, :] for i, t in enumerate(Ts)]


def _reference_one(x, w, level_embed):
    """Plain-JAX reference for one scale (same math, no Pallas)."""
    def ma(z, k):
        p = (k - 1) // 2
        T = z.shape[1]
        zp = jnp.concatenate([z[:, :1, :]] * p + [z] + [z[:, -1:, :]] * p, axis=1)
        acc = zp[:, 0:T, :]
        for j in range(1, k):
            acc = acc + zp[:, j:j + T, :]
        return acc * (1.0 / k)

    m1, m2, m3 = ma(x, 3), ma(x, 5), ma(x, 9)
    comps = (m3, m2 - m3, m1 - m2, x - m1)
    outs = []
    for j, comp in enumerate(comps):
        prev = jnp.concatenate([comp[:, -1:, :], comp[:, :-1, :]], axis=1)
        nxt = jnp.concatenate([comp[:, 1:, :], comp[:, :1, :]], axis=1)
        cat = jnp.concatenate([prev, comp, nxt], axis=-1)
        outs.append(jnp.einsum("btk,kd->btd", cat, w) + level_embed[j][None, None, :])
    return jnp.concatenate(outs, axis=-1)


if __name__ == "__main__":
    key = jax.random.PRNGKey(0)
    B, C, D = 2, 4, 32                 # batch, enc_in (channel_independence=False), d_model
    Ts = (16, 8, 4, 2)                 # TimeMixer multi-scale sequence lengths

    keys = jax.random.split(key, 10)
    x_list = [jax.random.normal(keys[i], (B, Ts[i], C), jnp.float32) for i in range(4)]
    level_embed = 0.1 * jax.random.normal(keys[4], (4, D), jnp.float32)

    # Deterministic init of the 4 TokenEmbedding conv weights (PyTorch [D, C, 3]),
    # reordered to [3C, D] with taps stacked as [t-1, t, t+1].
    conv_weights = []
    for i in range(4):
        w_pt = jax.random.normal(keys[5 + i], (D, C, 3), jnp.float32) / jnp.sqrt(3.0 * C)
        w_cat = jnp.concatenate([w_pt[:, :, k].T for k in range(3)], axis=0)  # (3C, D)
        conv_weights.append(w_cat)

    wbd, lvl_flat = prepare_token_embedding_params(conv_weights, level_embed)
    c_list = tmp_timemixer_embedding(x_list, wbd, lvl_flat)
    for c in c_list:
        jax.block_until_ready(c)

    # Sanity check vs a plain-JAX reference.  The kernel runs the MXU in bf16 and
    # writes bf16 output (review: halve writeback), so compare against the same
    # bf16-quantized weights with a bf16-level tolerance.
    for x, w, c in zip(x_list, conv_weights, c_list):
        w_q = w.astype(jnp.bfloat16).astype(jnp.float32)
        r = _reference_one(x, w_q, level_embed)
        assert c.shape == r.shape, (c.shape, r.shape)
        cf = c.astype(jnp.float32)
        assert bool(jnp.allclose(cf, r, atol=5e-2, rtol=5e-2)), \
            float(jnp.max(jnp.abs(cf - r)))

    print("KERNEL_OK")
</pallas_src>

<mosaic_0001>
module attributes {stable_mosaic.version = 11 : i64} {
  func.func @tmp_embed_kernel(%arg0: i32, %arg1: i32, %arg2: memref<4xi32, #tpu.memory_space<smem>>, %arg3: memref<1x2x4x24xf32, #tpu.memory_space<vmem>>, %arg4: memref<1x48x128xbf16, #tpu.memory_space<vmem>>, %arg5: memref<1x128xf32, #tpu.memory_space<vmem>>, %arg6: memref<1x2x16x128xbf16, #tpu.memory_space<vmem>>) attributes {dimension_semantics = [#tpu.dimension_semantics<parallel>, #tpu.dimension_semantics<parallel>], iteration_bounds = array<i64: 4, 1>, scalar_prefetch = 1 : i64, scratch_operands = 0 : i64, tpu.core_type = #tpu.core_type<tc>, window_params = [{transform_indices = @transform_0, window_bounds = array<i64: 1, 2, 4, 24>}, {transform_indices = @transform_1, window_bounds = array<i64: 1, 48, 128>}, {pipeline_mode = #tpu.pipeline_mode<synchronous>, transform_indices = @transform_2, window_bounds = array<i64: 1, 128>}, {transform_indices = @transform_3, window_bounds = array<i64: 1, 2, 16, 128>}]} {
    %0 = arith.index_cast %arg0 : i32 to index
    %1 = memref.load %arg2[%0] : memref<4xi32, #tpu.memory_space<smem>>
    %c0 = arith.constant 0 : index
    %c0_0 = arith.constant 0 : index
    %c0_1 = arith.constant 0 : index
    %c0_2 = arith.constant 0 : index
    %2 = vector.load %arg3[%c0, %c0_0, %c0_1, %c0_2] : memref<1x2x4x24xf32, #tpu.memory_space<vmem>>, vector<1x2x4x24xf32>
    %3 = vector.shape_cast %2 : vector<1x2x4x24xf32> to vector<2x4x24xf32>
    %c0_3 = arith.constant 0 : index
    %c0_4 = arith.constant 0 : index
    %c0_5 = arith.constant 0 : index
    %4 = vector.load %arg4[%c0_3, %c0_4, %c0_5] : memref<1x48x128xbf16, #tpu.memory_space<vmem>>, vector<1x48x128xbf16>
    %5 = vector.shape_cast %4 : vector<1x48x128xbf16> to vector<48x128xbf16>
    %c0_6 = arith.constant 0 : index
    %c0_7 = arith.constant 0 : index
    %6 = vector.load %arg5[%c0_6, %c0_7] : memref<1x128xf32, #tpu.memory_space<vmem>>, vector<1x128xf32>
    %7 = vector.extract_strided_slice %3 {offsets = [0, 0, 4], sizes = [2, 4, 16], strides = [1, 1, 1]} : vector<2x4x24xf32> to vector<2x4x16xf32>
    %8 = vector.extract_strided_slice %3 {offsets = [0, 0, 3], sizes = [2, 4, 16], strides = [1, 1, 1]} : vector<2x4x24xf32> to vector<2x4x16xf32>
    %9 = arith.addf %8, %7 : vector<2x4x16xf32>
    %10 = vector.extract_strided_slice %3 {offsets = [0, 0, 5], sizes = [2, 4, 16], strides = [1, 1, 1]} : vector<2x4x24xf32> to vector<2x4x16xf32>
    %11 = arith.addf %9, %10 : vector<2x4x16xf32>
    %12 = vector.extract_strided_slice %3 {offsets = [0, 0, 2], sizes = [2, 4, 16], strides = [1, 1, 1]} : vector<2x4x24xf32> to vector<2x4x16xf32>
    %13 = arith.addf %11, %12 : vector<2x4x16xf32>
    %14 = vector.extract_strided_slice %3 {offsets = [0, 0, 6], sizes = [2, 4, 16], strides = [1, 1, 1]} : vector<2x4x24xf32> to vector<2x4x16xf32>
    %15 = arith.addf %13, %14 : vector<2x4x16xf32>
    %16 = vector.extract_strided_slice %3 {offsets = [0, 0, 1], sizes = [2, 4, 16], strides = [1, 1, 1]} : vector<2x4x24xf32> to vector<2x4x16xf32>
    %17 = arith.addf %15, %16 : vector<2x4x16xf32>
    %18 = vector.extract_strided_slice %3 {offsets = [0, 0, 7], sizes = [2, 4, 16], strides = [1, 1, 1]} : vector<2x4x24xf32> to vector<2x4x16xf32>
    %19 = arith.addf %17, %18 : vector<2x4x16xf32>
    %20 = vector.extract_strided_slice %3 {offsets = [0, 0, 0], sizes = [2, 4, 16], strides = [1, 1, 1]} : vector<2x4x24xf32> to vector<2x4x16xf32>
    %21 = arith.addf %19, %20 : vector<2x4x16xf32>
    %22 = vector.extract_strided_slice %3 {offsets = [0, 0, 8], sizes = [2, 4, 16], strides = [1, 1, 1]} : vector<2x4x24xf32> to vector<2x4x16xf32>
    %23 = arith.addf %21, %22 : vector<2x4x16xf32>
    %cst = arith.constant 0.333333343 : f32
    %24 = vector.broadcast %cst : f32 to vector<2x4x16xf32>
    %25 = arith.mulf %11, %24 : vector<2x4x16xf32>
    %cst_8 = arith.constant 2.000000e-01 : f32
    %26 = vector.broadcast %cst_8 : f32 to vector<2x4x16xf32>
    %27 = arith.mulf %15, %26 : vector<2x4x16xf32>
    %cst_9 = arith.constant 0.111111112 : f32
    %28 = vector.broadcast %cst_9 : f32 to vector<2x4x16xf32>
    %29 = arith.mulf %23, %28 : vector<2x4x16xf32>
    %30 = arith.subf %27, %29 : vector<2x4x16xf32>
    %31 = arith.subf %25, %27 : vector<2x4x16xf32>
    %32 = arith.subf %7, %25 : vector<2x4x16xf32>
    %33 = tpu.iota {dimensions = array<i32: 2>} : vector<1x1x16xi32>
    %c0_i32 = arith.constant 0 : i32
    %34 = vector.broadcast %c0_i32 : i32 to vector<1x1x16xi32>
    %35 = arith.cmpi eq, %33, %34 : vector<1x1x16xi32>
    %c1_i32 = arith.constant 1 : i32
    %36 = arith.subi %1, %c1_i32 : i32
    %37 = vector.broadcast %36 : i32 to vector<1x1x16xi32>
    %38 = arith.cmpi eq, %33, %37 : vector<1x1x16xi32>
    %39 = vector.extract_strided_slice %29 {offsets = [0, 0, 15], sizes = [2, 4, 1], strides = [1, 1, 1]} : vector<2x4x16xf32> to vector<2x4x1xf32>
    %40 = vector.extract_strided_slice %29 {offsets = [0, 0, 0], sizes = [2, 4, 15], strides = [1, 1, 1]} : vector<2x4x16xf32> to vector<2x4x15xf32>
    %41 = tpu.concatenate %39, %40 in 2 : vector<2x4x1xf32>, vector<2x4x15xf32> -> vector<2x4x16xf32>
    %42 = vector.extract_strided_slice %29 {offsets = [0, 0, 1], sizes = [2, 4, 15], strides = [1, 1, 1]} : vector<2x4x16xf32> to vector<2x4x15xf32>
    %43 = vector.extract_strided_slice %29 {offsets = [0, 0, 0], sizes = [2, 4, 1], strides = [1, 1, 1]} : vector<2x4x16xf32> to vector<2x4x1xf32>
    %44 = tpu.concatenate %42, %43 in 2 : vector<2x4x15xf32>, vector<2x4x1xf32> -> vector<2x4x16xf32>
    %45 = vector.extract_strided_slice %29 {offsets = [0, 0, 0], sizes = [2, 4, 1], strides = [1, 1, 1]} : vector<2x4x16xf32> to vector<2x4x1xf32>
    %cst_10 = arith.constant 0.000000e+00 : f32
    %46 = vector.shape_cast %38 : vector<1x1x16xi1> to vector<1x1x16xi1>
    %47 = vector.broadcast %46 : vector<1x1x16xi1> to vector<2x4x16xi1>
    %48 = vector.broadcast %cst_10 : f32 to vector<2x4x16xf32>
    %49 = arith.select %47, %29, %48 : vector<2x4x16xi1>, vector<2x4x16xf32>
    %cst_11 = arith.constant dense<0.000000e+00> : vector<2x4xf32>
    %50 = vector.multi_reduction <add>, %49, %cst_11 [2] : vector<2x4x16xf32> to vector<2x4xf32>
    %51 = vector.shape_cast %50 : vector<2x4xf32> to vector<2x4x1xf32>
    %52 = vector.shape_cast %35 : vector<1x1x16xi1> to vector<1x1x16xi1>
    %53 = vector.broadcast %52 : vector<1x1x16xi1> to vector<2x4x16xi1>
    %54 = vector.shape_cast %51 : vector<2x4x1xf32> to vector<2x4x1xf32>
    %55 = vector.broadcast %54 : vector<2x4x1xf32> to vector<2x4x16xf32>
    %56 = arith.select %53, %55, %41 : vector<2x4x16xi1>, vector<2x4x16xf32>
    %57 = vector.shape_cast %38 : vector<1x1x16xi1> to vector<1x1x16xi1>
    %58 = vector.broadcast %57 : vector<1x1x16xi1> to vector<2x4x16xi1>
    %59 = vector.shape_cast %45 : vector<2x4x1xf32> to vector<2x4x1xf32>
    %60 = vector.broadcast %59 : vector<2x4x1xf32> to vector<2x4x16xf32>
    %61 = arith.select %58, %60, %44 : vector<2x4x16xi1>, vector<2x4x16xf32>
    %62 = vector.extract_strided_slice %30 {offsets = [0, 0, 15], sizes = [2, 4, 1], strides = [1, 1, 1]} : vector<2x4x16xf32> to vector<2x4x1xf32>
    %63 = vector.extract_strided_slice %30 {offsets = [0, 0, 0], sizes = [2, 4, 15], strides = [1, 1, 1]} : vector<2x4x16xf32> to vector<2x4x15xf32>
    %64 = tpu.concatenate %62, %63 in 2 : vector<2x4x1xf32>, vector<2x4x15xf32> -> vector<2x4x16xf32>
    %65 = vector.extract_strided_slice %30 {offsets = [0, 0, 1], sizes = [2, 4, 15], strides = [1, 1, 1]} : vector<2x4x16xf32> to vector<2x4x15xf32>
    %66 = vector.extract_strided_slice %30 {offsets = [0, 0, 0], sizes = [2, 4, 1], strides = [1, 1, 1]} : vector<2x4x16xf32> to vector<2x4x1xf32>
    %67 = tpu.concatenate %65, %66 in 2 : vector<2x4x15xf32>, vector<2x4x1xf32> -> vector<2x4x16xf32>
    %68 = vector.extract_strided_slice %30 {offsets = [0, 0, 0], sizes = [2, 4, 1], strides = [1, 1, 1]} : vector<2x4x16xf32> to vector<2x4x1xf32>
    %cst_12 = arith.constant 0.000000e+00 : f32
    %69 = vector.shape_cast %38 : vector<1x1x16xi1> to vector<1x1x16xi1>
    %70 = vector.broadcast %69 : vector<1x1x16xi1> to vector<2x4x16xi1>
    %71 = vector.broadcast %cst_12 : f32 to vector<2x4x16xf32>
    %72 = arith.select %70, %30, %71 : vector<2x4x16xi1>, vector<2x4x16xf32>
    %cst_13 = arith.constant dense<0.000000e+00> : vector<2x4xf32>
    %73 = vector.multi_reduction <add>, %72, %cst_13 [2] : vector<2x4x16xf32> to vector<2x4xf32>
    %74 = vector.shape_cast %73 : vector<2x4xf32> to vector<2x4x1xf32>
    %75 = vector.shape_cast %35 : vector<1x1x16xi1> to vector<1x1x16xi1>
    %76 = vector.broadcast %75 : vector<1x1x16xi1> to vector<2x4x16xi1>
    %77 = vector.shape_cast %74 : vector<2x4x1xf32> to vector<2x4x1xf32>
    %78 = vector.broadcast %77 : vector<2x4x1xf32> to vector<2x4x16xf32>
    %79 = arith.select %76, %78, %64 : vector<2x4x16xi1>, vector<2x4x16xf32>
    %80 = vector.shape_cast %38 : vector<1x1x16xi1> to vector<1x1x16xi1>
    %81 = vector.broadcast %80 : vector<1x1x16xi1> to vector<2x4x16xi1>
    %82 = vector.shape_cast %68 : vector<2x4x1xf32> to vector<2x4x1xf32>
    %83 = vector.broadcast %82 : vector<2x4x1xf32> to vector<2x4x16xf32>
    %84 = arith.select %81, %83, %67 : vector<2x4x16xi1>, vector<2x4x16xf32>
    %85 = vector.extract_strided_slice %31 {offsets = [0, 0, 15], sizes = [2, 4, 1], strides = [1, 1, 1]} : vector<2x4x16xf32> to vector<2x4x1xf32>
    %86 = vector.extract_strided_slice %31 {offsets = [0, 0, 0], sizes = [2, 4, 15], strides = [1, 1, 1]} : vector<2x4x16xf32> to vector<2x4x15xf32>
    %87 = tpu.concatenate %85, %86 in 2 : vector<2x4x1xf32>, vector<2x4x15xf32> -> vector<2x4x16xf32>
    %88 = vector.extract_strided_slice %31 {offsets = [0, 0, 1], sizes = [2, 4, 15], strides = [1, 1, 1]} : vector<2x4x16xf32> to vector<2x4x15xf32>
    %89 = vector.extract_strided_slice %31 {offsets = [0, 0, 0], sizes = [2, 4, 1], strides = [1, 1, 1]} : vector<2x4x16xf32> to vector<2x4x1xf32>
    %90 = tpu.concatenate %88, %89 in 2 : vector<2x4x15xf32>, vector<2x4x1xf32> -> vector<2x4x16xf32>
    %91 = vector.extract_strided_slice %31 {offsets = [0, 0, 0], sizes = [2, 4, 1], strides = [1, 1, 1]} : vector<2x4x16xf32> to vector<2x4x1xf32>
    %cst_14 = arith.constant 0.000000e+00 : f32
    %92 = vector.shape_cast %38 : vector<1x1x16xi1> to vector<1x1x16xi1>
    %93 = vector.broadcast %92 : vector<1x1x16xi1> to vector<2x4x16xi1>
    %94 = vector.broadcast %cst_14 : f32 to vector<2x4x16xf32>
    %95 = arith.select %93, %31, %94 : vector<2x4x16xi1>, vector<2x4x16xf32>
    %cst_15 = arith.constant dense<0.000000e+00> : vector<2x4xf32>
    %96 = vector.multi_reduction <add>, %95, %cst_15 [2] : vector<2x4x16xf32> to vector<2x4xf32>
    %97 = vector.shape_cast %96 : vector<2x4xf32> to vector<2x4x1xf32>
    %98 = vector.shape_cast %35 : vector<1x1x16xi1> to vector<1x1x16xi1>
    %99 = vector.broadcast %98 : vector<1x1x16xi1> to vector<2x4x16xi1>
    %100 = vector.shape_cast %97 : vector<2x4x1xf32> to vector<2x4x1xf32>
    %101 = vector.broadcast %100 : vector<2x4x1xf32> to vector<2x4x16xf32>
    %102 = arith.select %99, %101, %87 : vector<2x4x16xi1>, vector<2x4x16xf32>
    %103 = vector.shape_cast %38 : vector<1x1x16xi1> to vector<1x1x16xi1>
    %104 = vector.broadcast %103 : vector<1x1x16xi1> to vector<2x4x16xi1>
    %105 = vector.shape_cast %91 : vector<2x4x1xf32> to vector<2x4x1xf32>
    %106 = vector.broadcast %105 : vector<2x4x1xf32> to vector<2x4x16xf32>
    %107 = arith.select %104, %106, %90 : vector<2x4x16xi1>, vector<2x4x16xf32>
    %108 = vector.extract_strided_slice %32 {offsets = [0, 0, 15], sizes = [2, 4, 1], strides = [1, 1, 1]} : vector<2x4x16xf32> to vector<2x4x1xf32>
    %109 = vector.extract_strided_slice %32 {offsets = [0, 0, 0], sizes = [2, 4, 15], strides = [1, 1, 1]} : vector<2x4x16xf32> to vector<2x4x15xf32>
    %110 = tpu.concatenate %108, %109 in 2 : vector<2x4x1xf32>, vector<2x4x15xf32> -> vector<2x4x16xf32>
    %111 = vector.extract_strided_slice %32 {offsets = [0, 0, 1], sizes = [2, 4, 15], strides = [1, 1, 1]} : vector<2x4x16xf32> to vector<2x4x15xf32>
    %112 = vector.extract_strided_slice %32 {offsets = [0, 0, 0], sizes = [2, 4, 1], strides = [1, 1, 1]} : vector<2x4x16xf32> to vector<2x4x1xf32>
    %113 = tpu.concatenate %111, %112 in 2 : vector<2x4x15xf32>, vector<2x4x1xf32> -> vector<2x4x16xf32>
    %114 = vector.extract_strided_slice %32 {offsets = [0, 0, 0], sizes = [2, 4, 1], strides = [1, 1, 1]} : vector<2x4x16xf32> to vector<2x4x1xf32>
    %cst_16 = arith.constant 0.000000e+00 : f32
    %115 = vector.shape_cast %38 : vector<1x1x16xi1> to vector<1x1x16xi1>
    %116 = vector.broadcast %115 : vector<1x1x16xi1> to vector<2x4x16xi1>
    %117 = vector.broadcast %cst_16 : f32 to vector<2x4x16xf32>
    %118 = arith.select %116, %32, %117 : vector<2x4x16xi1>, vector<2x4x16xf32>
    %cst_17 = arith.constant dense<0.000000e+00> : vector<2x4xf32>
    %119 = vector.multi_reduction <add>, %118, %cst_17 [2] : vector<2x4x16xf32> to vector<2x4xf32>
    %120 = vector.shape_cast %119 : vector<2x4xf32> to vector<2x4x1xf32>
    %121 = vector.shape_cast %35 : vector<1x1x16xi1> to vector<1x1x16xi1>
    %122 = vector.broadcast %121 : vector<1x1x16xi1> to vector<2x4x16xi1>
    %123 = vector.shape_cast %120 : vector<2x4x1xf32> to vector<2x4x1xf32>
    %124 = vector.broadcast %123 : vector<2x4x1xf32> to vector<2x4x16xf32>
    %125 = arith.select %122, %124, %110 : vector<2x4x16xi1>, vector<2x4x16xf32>
    %126 = vector.shape_cast %38 : vector<1x1x16xi1> to vector<1x1x16xi1>
    %127 = vector.broadcast %126 : vector<1x1x16xi1> to vector<2x4x16xi1>
    %128 = vector.shape_cast %114 : vector<2x4x1xf32> to vector<2x4x1xf32>
    %129 = vector.broadcast %128 : vector<2x4x1xf32> to vector<2x4x16xf32>
    %130 = arith.select %127, %129, %113 : vector<2x4x16xi1>, vector<2x4x16xf32>
    %131 = tpu.concatenate %56, %29, %61, %79, %30, %84, %102, %31, %107, %125, %32, %130 in 1 : vector<2x4x16xf32>, vector<2x4x16xf32>, vector<2x4x16xf32>, vector<2x4x16xf32>, vector<2x4x16xf32>, vector<2x4x16xf32>, vector<2x4x16xf32>, vector<2x4x16xf32>, vector<2x4x16xf32>, vector<2x4x16xf32>, vector<2x4x16xf32>, vector<2x4x16xf32> -> vector<2x48x16xf32>
    %132 = vector.extract_strided_slice %131 {offsets = [0, 0, 0], sizes = [1, 48, 16], strides = [1, 1, 1]} : vector<2x48x16xf32> to vector<1x48x16xf32>
    %133 = vector.shape_cast %132 : vector<1x48x16xf32> to vector<48x16xf32>
    %134 = tpu.transpose %133, [1, 0] : vector<48x16xf32> -> vector<16x48xf32>
    %135 = arith.truncf %134 : vector<16x48xf32> to vector<16x48xbf16>
    %cst_18 = arith.constant dense<0.000000e+00> : vector<16x128xf32>
    %136 = tpu.matmul %135, %5, %cst_18 {dimension_numbers = #tpu.dot_dimension_numbers<[1], [0], [0], [1], [0, 0, 1, 1], [], []>} : vector<16x48xbf16>, vector<48x128xbf16>, vector<16x128xf32> -> vector<16x128xf32>
    %137 = vector.broadcast %6 : vector<1x128xf32> to vector<16x128xf32>
    %138 = arith.addf %136, %137 : vector<16x128xf32>
    %139 = arith.truncf %138 : vector<16x128xf32> to vector<16x128xbf16>
    %c0_19 = arith.constant 0 : index
    %c0_20 = arith.constant 0 : index
    %c0_21 = arith.constant 0 : index
    %c0_22 = arith.constant 0 : index
    %140 = vector.load %arg6[%c0_19, %c0_20, %c0_21, %c0_22] : memref<1x2x16x128xbf16, #tpu.memory_space<vmem>>, vector<1x1x16x128xbf16>
    %141 = vector.shape_cast %140 : vector<1x1x16x128xbf16> to vector<16x128xbf16>
    %142 = vector.shape_cast %139 : vector<16x128xbf16> to vector<1x1x16x128xbf16>
    tpu.vector_store %arg6[%c0_19, %c0_20, %c0_21, %c0_22], %142 {strides = array<i32>} : memref<1x2x16x128xbf16, #tpu.memory_space<vmem>>, vector<1x1x16x128xbf16>,
    %143 = vector.extract_strided_slice %131 {offsets = [1, 0, 0], sizes = [1, 48, 16], strides = [1, 1, 1]} : vector<2x48x16xf32> to vector<1x48x16xf32>
    %144 = vector.shape_cast %143 : vector<1x48x16xf32> to vector<48x16xf32>
    %145 = tpu.transpose %144, [1, 0] : vector<48x16xf32> -> vector<16x48xf32>
    %146 = arith.truncf %145 : vector<16x48xf32> to vector<16x48xbf16>
    %cst_23 = arith.constant dense<0.000000e+00> : vector<16x128xf32>
    %147 = tpu.matmul %146, %5, %cst_23 {dimension_numbers = #tpu.dot_dimension_numbers<[1], [0], [0], [1], [0, 0, 1, 1], [], []>} : vector<16x48xbf16>, vector<48x128xbf16>, vector<16x128xf32> -> vector<16x128xf32>
    %148 = vector.broadcast %6 : vector<1x128xf32> to vector<16x128xf32>
    %149 = arith.addf %147, %148 : vector<16x128xf32>
    %150 = arith.truncf %149 : vector<16x128xf32> to vector<16x128xbf16>
    %c0_24 = arith.constant 0 : index
    %c1 = arith.constant 1 : index
    %c0_25 = arith.constant 0 : index
    %c0_26 = arith.constant 0 : index
    %151 = vector.load %arg6[%c0_24, %c1, %c0_25, %c0_26] : memref<1x2x16x128xbf16, #tpu.memory_space<vmem>>, vector<1x1x16x128xbf16>
    %152 = vector.shape_cast %151 : vector<1x1x16x128xbf16> to vector<16x128xbf16>
    %153 = vector.shape_cast %150 : vector<16x128xbf16> to vector<1x1x16x128xbf16>
    tpu.vector_store %arg6[%c0_24, %c1, %c0_25, %c0_26], %153 {strides = array<i32>} : memref<1x2x16x128xbf16, #tpu.memory_space<vmem>>, vector<1x1x16x128xbf16>,
    return
  }
  func.func @transform_0(%arg0: i32, %arg1: i32, %arg2: memref<4xi32, #tpu.memory_space<smem>>) -> (i32, i32, i32, i32) {
    %c0_i32 = arith.constant 0 : i32
    %c0_i32_0 = arith.constant 0 : i32
    %c0_i32_1 = arith.constant 0 : i32
    return %arg0, %arg1, %c0_i32, %c0_i32_0 : i32, i32, i32, i32
  }
  func.func @transform_1(%arg0: i32, %arg1: i32, %arg2: memref<4xi32, #tpu.memory_space<smem>>) -> (i32, i32, i32) {
    %c0_i32 = arith.constant 0 : i32
    %c0_i32_0 = arith.constant 0 : i32
    %c0_i32_1 = arith.constant 0 : i32
    return %arg0, %c0_i32, %c0_i32_0 : i32, i32, i32
  }
  func.func @transform_2(%arg0: i32, %arg1: i32, %arg2: memref<4xi32, #tpu.memory_space<smem>>) -> (i32, i32) {
    %c0_i32 = arith.constant 0 : i32
    %c0_i32_0 = arith.constant 0 : i32
    %c0_i32_1 = arith.constant 0 : i32
    return %c0_i32, %c0_i32_0 : i32, i32
  }
  func.func @transform_3(%arg0: i32, %arg1: i32, %arg2: memref<4xi32, #tpu.memory_space<smem>>) -> (i32, i32, i32, i32) {
    %c0_i32 = arith.constant 0 : i32
    %c0_i32_0 = arith.constant 0 : i32
    %c0_i32_1 = arith.constant 0 : i32
    return %arg0, %arg1, %c0_i32, %c0_i32_0 : i32, i32, i32, i32
  }
}

</mosaic_0001>

<bundles_post_ra>
// kernel: tpu_custom_call.1
= control target key start
LH: loop header
LB: loop body
LE: loop exit
PB: predicated region body
PF: predicated region fallthrough
CT: control target
= control target key end

     0   :  { %s1949_s0 = inlined_call_operand.hbm [shape: s32[4], index: 0, kind: input, shape index: {}]   ;;  %s1950_s1 = inlined_call_operand.hbm [shape: f32[4,2,4,24], index: 1, kind: input, shape index: {}]   ;;  %s1951_s2 = inlined_call_operand.hbm [shape: bf16[4,48,128], index: 2, kind: input, shape index: {}]   ;;  %s1952_s3 = inlined_call_operand.vmem [shape: f32[1,128], index: 3, kind: input, shape index: {}]   ;;  %s1953_s4 = inlined_call_operand.hbm [shape: bf16[4,2,16,128], index: 4, kind: output, shape index: {}]  }
   0x1   :  { %s1272_s17 = scalar_lea.hbm %s1949_s0, 16 }
   0x2   :  { %p1273_p0 = scmp.ne.s32.totalorder %s1949_s0, %s1272_s17  ;;  %p1276_p1 = scmp.lt.u32.totalorder %s1272_s17, %s1949_s0 }
   0x4   :  { %p1278_p2 = pnand %p1276_p1, %p1273_p0 }
   0x6   :  { %1281 = shalt.err (!%p1278_p2)  }
   0x7   :  { %s1432_s22 = smov [#allocation3]  }
   0x8   :  { %10 = dma.hbm_to_smem %s1949_s0, 16, %s1432_s22, [#allocation2] }
   0x9   :  { %1394 = dma.done.wait [#allocation2], 16 }
   0xa   :  { %1395 = vsyncadd [#allocation2], 4294967280 }
   0xb   :  { %12 = sfence }
   0xc   :  { %13 = vsyncpa [#allocation5], 0 }
   0xd   :  { %15 = vsyncpa [#allocation5 + $0x1], 0 }
   0xe   :  { %16 = vsyncpa [#allocation8], 0 }
   0xf   :  { %18 = vsyncpa [#allocation8 + $0x1], 0 }
  0x10   :  { %19 = vsyncpa [#allocation6], 0 }
  0x11   :  { %21 = vsyncpa [#allocation6 + $0x1], 0  ;;  %s1493_s25 = smov 0   ;;  %s1495_s26 = smov 0  }
  0x12   :  { %s1497_s27 = smov 0   ;;  %s1499_s28 = smov 0  }
  0x13   :  { %s1501_s29 = smov 0   ;;  %s1503_s0 = smov 0  }
  0x14 LB: > { %s968_s30 = sadd.s32 4294967295, %s1430_s0   ;;  %s969_s5 = sadd.s32 4294967294, %s1430_s0   ;;  %s1430_s0 = sphi %s1503_s0, %s27_s0   ;;  %s1426_s29 = sphi %s1501_s29, %s1972_s29   ;;  %s1422_s28 = sphi %s1499_s28, %s1971_s28   ;;  %s1418_s27 = sphi %s1497_s27, %s1970_s27   ;;  %s1414_s26 = sphi %s1495_s26, %s1969_s26   ;;  %s1410_s25 = sphi %s1493_s25, %s1968_s25  }
  0x15   : > { %s39_s6 = sadd.s32 1, %s1426_s29  ;;  %s48_s7 = sadd.s32 1, %s1418_s27 }
  0x16   : > { %p41_p3 = scmp.ge.s32.totalorder %s39_s6, 4  ;;  %p55_p4 = scmp.ne.s32.totalorder %s1418_s27, %s1414_s26 }
  0x17   : > { %p56_p5 = scmp.eq.s32.totalorder %s1430_s0, 0  ;;  %p61_p6 = scmp.ne.s32.totalorder %s1414_s26, %s1410_s25 }
  0x18   : > { %s1974_s6 = smov (%p41_p3, %s39_s6), 0  ;;  %p62_p8 = scmp.eq.s32.totalorder %s968_s30, 0 }
  0x19   : > { %p1534_p7 = por %p56_p5, %p55_p4  ;;  %s43_s9 = ssub.s32 %s1426_s29, %s1974_s6 }
  0x1a   : > { %p134_p9 = scmp.eq.s32.totalorder %s968_s30, 3  ;;  %p46_p10 = scmp.eq.s32.totalorder %s43_s9, 0 }
  0x1b   : > { %p1540_p11 = por %p62_p8, %p61_p6  ;;  %p140_p13 = scmp.eq.s32.totalorder %s969_s5, 3 }
  0x1c   : > { %p1544_p12 = por %p134_p9, %p55_p4  ;;  %p1062_p1 = scmp.lt.s32.totalorder %s1430_s0, 4 }
  0x1d   : > { %s1957_s10 = scalar_select %p1540_p11, 1, 0 }
  0x1e   : > { %s1958_s11 = scalar_select %p1544_p12, 1, 0 }
  0x1f   : > { %s1549_s12 = scalar_select %p46_p10, %s1418_s27, %s48_s7  }
  0x20   : > { %p1551_p0 = por %p140_p13, %p61_p6  ;;  %s1557_s14 = sand.u32 1, %s1418_s27  }
  0x21   : > { %s972_s15 = sshll.u32 %s1557_s14, 3  ;;  %s997_s16 = sshll.u32 %s1426_s29, 7 }
  0x22   : > { %s1959_s13 = scalar_select %p1551_p0, 1, 0 }
  0x23   : > { %s1564_s19 = scalar_lea.hbm %s1950_s1, %s997_s16  ;;  %s167_s20 = scalar_lea.vmem [#allocation4], %s972_s15 }
  0x24   : > { %s176_s21 = sshll.u32 %s167_s20, 4  ;;  %p1570_p2 = pnand %p1062_p1, %p1534_p7  ;;  %s1566_s21 = int_to_ptr.vmem [resolvable:$true] %s176_s21 }
  0x25   : > { %s164_s23 = scalar_lea.sflag [#allocation5], %s1557_s14  ;;  %s1282_s24 = scalar_lea.hbm %s1564_s19, 128 }
  0x26   : > { %p1283_p4 = scmp.ne.s32.totalorder %s1564_s19, %s1282_s24  ;;  %p1284_p5 = pneg %p1570_p2 }
  0x27   : > { %s1287_s7 = scalar_lea.hbm %s1950_s1, 512  ;;  %p1288_p7 = scmp.lt.u32.totalorder %s1564_s19, %s1950_s1 }
  0x28   : > { %p1285_p6 = pnand %p1284_p5, %p1283_p4  ;;  %p1289_p9 = scmp.lt.u32.totalorder %s1287_s7, %s1282_s24 }
  0x29   : > { %p1291_p13 = scmp.lt.u32.totalorder %s1282_s24, %s1564_s19 }
  0x2a   : > { %p1286_p8 = pneg %p1285_p6  ;;  %p1290_p10 = por %p1289_p9, %p1288_p7 }
  0x2c   : > { %p1292_p1 = por %p1291_p13, %p1290_p10 }
  0x2e   : > { %p1293_p3 = pnand %p1292_p1, %p1286_p8 }
  0x30   : > { %1296 = shalt.err (!%p1293_p3)
}
  0x31   : > { %s1297_s15 = scalar_lea.vmem %s1566_s21, 128  ;;  %s1433_s16 = smov [#allocation4]  }
  0x32   : > { %p1298_p4 = scmp.ne.s32.totalorder %s1566_s21, %s1297_s15  ;;  %s1302_s17 = sshll.u32 %s1433_s16, 4  ;;  %s1303_s17 = int_to_ptr.vmem [resolvable:$false] %s1302_s17 }
  0x33   : > { %s1304_s18 = scalar_lea.vmem %s1303_s17, 256  ;;  %p1305_p12 = scmp.lt.s32.totalorder %s1566_s21, %s1303_s17 }
  0x34   : > { %p1300_p6 = pnand %p1298_p4, %p1284_p5  ;;  %p1306_p7 = scmp.lt.s32.totalorder %s1304_s18, %s1297_s15 }
  0x36   : > { %p1301_p0 = pneg %p1300_p6  ;;  %p1307_p9 = por %p1306_p7, %p1305_p12 }
  0x38   : > { %p1308_p10 = pnand %p1307_p9, %p1301_p0 }
  0x3a   : > { %1311 = shalt.err (!%p1308_p10)
}
  0x3b   : > { %s1434_s20 = smov 64   ;;  %s1435_s24 = smov 4  }
  0x3c   : > { %1054 = dma.hbm_to_vmem [thread:$0]  (!%p1570_p2), %s1564_s19, 128, %s1566_s21, %s164_s23, %s1434_s20, %s1434_s20, %s1435_s24  }
  0x3d   : > { %p205_p12 = scmp.lt.s32.totalorder %s1430_s0, 5  ;;  %s1042_s30 = smul.u32 24, %s1557_s14 }
  0x3e   : > { %p1961_p0 = scmp.ge.s32.totalorder %s1430_s0, 1  ;;  %s1043_s7 = smul.u32 384, %s1426_s29 }
  0x3f   : > { %s190_s16 = scalar_lea.vmem [#allocation7], %s1042_s30  ;;  %s187_s19 = scalar_lea.sflag [#allocation8], %s1557_s14 }
  0x40   : > { %p1610_p3 = pnand %p1961_p0, %p205_p12  ;;  %s1618_s15 = scalar_lea.hbm %s1951_s2, %s1043_s7 }
  0x41   : > { %s197_s17 = sshll.u32 %s190_s16, 4  ;;  %s1312_s21 = scalar_lea.hbm %s1618_s15, 384  ;;  %s1620_s17 = int_to_ptr.vmem [resolvable:$true] %s197_s17 }
  0x42   : > { %p1313_p8 = scmp.ne.s32.totalorder %s1618_s15, %s1312_s21  ;;  %s1317_s7 = scalar_lea.hbm %s1951_s2, 1536 }
  0x43   : > { %p1318_p4 = scmp.lt.u32.totalorder %s1618_s15, %s1951_s2  ;;  %p1319_p6 = scmp.lt.u32.totalorder %s1317_s7, %s1312_s21 }
  0x44   : > { %p1315_p13 = pnand %p1313_p8, %p1284_p5  ;;  %p1321_p9 = scmp.lt.u32.totalorder %s1312_s21, %s1618_s15 }
  0x45   : > { %p1320_p7 = por %p1319_p6, %p1318_p4 }
  0x46   : > { %p1316_p1 = pneg %p1315_p13 }
  0x47   : > { %p1322_p10 = por %p1321_p9, %p1320_p7 }
  0x49   : > { %p1323_p12 = pnand %p1322_p10, %p1316_p1 }
  0x4b   : > { %1326 = shalt.err (!%p1323_p12)
}
  0x4c   : > { %s1327_s30 = scalar_lea.vmem %s1620_s17, 384  ;;  %s1436_s16 = smov [#allocation7]  }
  0x4d   : > { %p1328_p0 = scmp.ne.s32.totalorder %s1620_s17, %s1327_s30  ;;  %s1332_s23 = sshll.u32 %s1436_s16, 4  ;;  %s1333_s23 = int_to_ptr.vmem [resolvable:$false] %s1332_s23 }
  0x4e   : > { %s1334_s18 = scalar_lea.vmem %s1333_s23, 768  ;;  %p1335_p11 = scmp.lt.s32.totalorder %s1620_s17, %s1333_s23 }
  0x4f   : > { %p1330_p8 = pnand %p1328_p0, %p1284_p5  ;;  %p1336_p4 = scmp.lt.s32.totalorder %s1334_s18, %s1327_s30 }
  0x51   : > { %p1331_p13 = pneg %p1330_p8  ;;  %p1337_p6 = por %p1336_p4, %p1335_p11 }
  0x53   : > { %p1338_p7 = pnand %p1337_p6, %p1331_p13 }
  0x55   : > { %1341 = shalt.err (!%p1338_p7)
}
  0x56   : > { %1057 = dma.hbm_to_vmem [thread:$0]  (!%p1570_p2), %s1618_s15, 384, %s1620_s17, %s187_s19, %s1434_s20, %s1434_s20, %s1435_s24  }
  0x57   : > { %209 = sbr.rel (%p1610_p3) target bundleno = 964 (0x3c4), region = 32  ;;  %s1654_s21 = sand.u32 (!%p1610_p3), 1, %s1414_s26  }
  0x58   : > { %s977_s7 = sshll.u32 (!%p1610_p3), %s1654_s21, 3  ;;  %s212_s8 = scalar_lea.sflag (!%p1610_p3), [#allocation5], %s1654_s21 }
  0x59   : > { %s215_s22 = scalar_lea.vmem (!%p1610_p3), [#allocation4], %s977_s7  ;;  %p1963_p11 = scmp.ne.s32.totalorder (!%p1610_p3), %s1957_s10, 0 }
  0x5e   : > { %1397 = dma.done.wait (%p1963_p11), %s212_s8, 128  }
  0x5f   : > { %1399 = vsyncadd (%p1963_p11), %s212_s8, 4294967168  ;;  %s1044_s14 = smul.u32 24, %s1654_s21  ;;  %s221_s20 = scalar_lea.sflag [#allocation8], %s1654_s21 }
  0x61   : > { %s1664_s24 = scalar_lea.vmem [#allocation7], %s1044_s14 }
  0x62   : > { %1401 = dma.done.wait (%p1963_p11), %s221_s20, 384  }
  0x63   : > { %1403 = vsyncadd (%p1963_p11), %s221_s20, 4294966912  ;;  %v1670_v0 = vld [vmem:[%s215_s22] sm:$0xf]  ;;  %s1437_s5 = smov 126   ;;  %s1438_s15 = smov 127   ;;  %v1440_v2 = vmov 3   ;;  %v351_v62 = vlaneseq }
  0x64   : > { %275 = vrot.lane.b32.xlu1 %v1670_v0, %s1437_s5  ;;  %267 = vrot.lane.b32.xlu0 %v1670_v0, %s1438_s15  ;;  %v1675_v1 = vld [vmem:[%s215_s22 + $0x4] sm:$0xf]  ;;  %s1439_s17 = smov 1   ;;  %s1441_s10 = smov 125   ;;  %v1447_v53 = vmov 4   ;;  %vm371_vm0 = vcmask 7168  }
  0x65   : > { %1133 = vset.pattern.permute.xlu0 %v1440_v2  ;;  %1149 = vset.pattern.permute.xlu1 %v1440_v2  ;;  %s1442_s19 = smov 2   ;;  %s1443_s9 = smov 124   ;;  %vm399_vm2 = vcmask 125952   ;;  %vm386_vm3 = vcmask 121856   ;;  %vm628_vm4 = vcmask 1043456   ;;  %vm1452_vm6 = vmmov 0  }
  0x66   : > { %s1444_s30 = smov 3   ;;  %s1445_s16 = smov 123   ;;  %vm698_vm7 = vcmask 392192  }
  0x67   : > { %s1446_s23 = smov 110   ;;  %s1448_s18 = smov 12  }
  0x68   : > { %277 = vrot.lane.b32.xlu1 %v1675_v1, %s1437_s5  ;;  %269 = vrot.lane.b32.xlu0 %v1675_v1, %s1438_s15  ;;  %s1449_s7 = smov 109   ;;  %s255_s8 = sld [smem:[#allocation3 + %s1422_s28]] }
  0x69   : > { %s1450_s14 = smov 11   ;;  %s978_s20 = sshll.u32 %s1654_s21, 4 }
  0x6a   : > { %s251_s15 = scalar_lea.vmem [#allocation9], %s978_s20  ;;  %p1966_p5 = scmp.ne.s32.totalorder %s1958_s11, 0 }
  0x6c   : > { %285 = vrot.lane.b32.xlu1 %v1675_v1, %s1439_s17  ;;  %283 = vrot.lane.b32.xlu0 %v1670_v0, %s1439_s17 }
  0x6e   : > { %s979_s22 = sadd.s32 4294967295, %s255_s8 }
  0x6f   : > { %v355_v2 = vstv %s979_s22 }
  0x70   : > { %293 = vrot.lane.b32.xlu1 %v1675_v1, %s1441_s10  ;;  %291 = vrot.lane.b32.xlu0 %v1670_v0, %s1441_s10 }
  0x74   : > { %301 = vrot.lane.b32.xlu1 %v1675_v1, %s1442_s19  ;;  %299 = vrot.lane.b32.xlu0 %v1670_v0, %s1442_s19 }
  0x78   : > { %309 = vrot.lane.b32.xlu1 %v1675_v1, %s1443_s9  ;;  %307 = vrot.lane.b32.xlu0 %v1670_v0, %s1443_s9 }
  0x7c   : > { %317 = vrot.lane.b32.xlu1 %v1675_v1, %s1444_s30  ;;  %315 = vrot.lane.b32.xlu0 %v1670_v0, %s1444_s30 }
  0x80   : > { %325 = vrot.lane.b32.xlu1 %v1675_v1, %s1445_s16  ;;  %323 = vrot.lane.b32.xlu0 %v1670_v0, %s1445_s16 }
  0xd6   : > { %v276_v3 = vpop.permute.xlu1 %275  ;;  %v268_v4 = vpop.permute.xlu0 %267 }
  0xd7   : > { %v273_v5 = vadd.f32 %v268_v4, %v1670_v0 }
  0xd9   : > { %v281_v6 = vadd.f32 %v276_v3, %v273_v5 }
  0xda   : > { %v278_v7 = vpop.permute.xlu1 %277  ;;  %v270_v8 = vpop.permute.xlu0 %269 }
  0xdb   : > { %v274_v9 = vadd.f32 %v270_v8, %v1675_v1  ;;  %v331_v10 = vmul.f32 0.33333334, %v281_v6 }
  0xdd   : > { %343 = vrot.lane.b32.xlu0 %v331_v10, %s1439_s17  ;;  %v282_v11 = vadd.f32 %v278_v7, %v274_v9 }
  0xde   : > { %v286_v12 = vpop.permute.xlu1 %285  ;;  %v284_v13 = vpop.permute.xlu0 %283 }
  0xdf   : > { %v332_v14 = vmul.f32 0.33333334, %v282_v11  ;;  %v290_v15 = vadd.f32 %v286_v12, %v282_v11  ;;  %v289_v16 = vadd.f32 %v284_v13, %v281_v6 }
  0xe1   : > { %345 = vrot.lane.b32.xlu1 %v332_v14, %s1439_s17  ;;  %s858_s17 = sshll.u32 %s251_s15, 4  ;;  %s1896_s17 = int_to_ptr.vmem [resolvable:$true] %s858_s17 }
  0xe2   : > { %v294_v17 = vpop.permute.xlu1 %293  ;;  %v292_v18 = vpop.permute.xlu0 %291 }
  0xe3   : > { %v298_v19 = vadd.f32 %v294_v17, %v290_v15  ;;  %v297_v20 = vadd.f32 %v292_v18, %v289_v16 }
  0xe5   : > { %v334_v21 = vmul.f32 0.2, %v298_v19  ;;  %v333_v22 = vmul.f32 0.2, %v297_v20 }
  0xe6   : > { %v302_v23 = vpop.permute.xlu1 %301  ;;  %v300_v24 = vpop.permute.xlu0 %299 }
  0xe7   : > { %v340_v25 = vsub.f32 %v332_v14, %v334_v21  ;;  %v339_v26 = vsub.f32 %v331_v10, %v333_v22  ;;  %v306_v33 = vadd.f32 %v302_v23, %v298_v19  ;;  %v305_v34 = vadd.f32 %v300_v24, %v297_v20 }
  0xe9   : > { %508 = vrot.lane.b32.xlu1 %v340_v25, %s1441_s10  ;;  %506 = vrot.lane.b32.xlu0 %v339_v26, %s1441_s10  ;;  %v608_v27 = vrot.slane %v339_v26, 4  ;;  %v1210_v30 = vpack.i.bf16 %v340_v25, %v339_v26  ;;  %v609_v31 = vrot.slane %v340_v25, 4 }
  0xea   : > { %v310_v28 = vpop.permute.xlu1 %309  ;;  %v308_v29 = vpop.permute.xlu0 %307 }
  0xeb   : > { %v1706_v32 = vpack.i.bf16 %v609_v31, %v608_v27  ;;  %v314_v37 = vadd.f32 %v310_v28, %v306_v33  ;;  %v313_v38 = vadd.f32 %v308_v29, %v305_v34 }
  0xed   : > { %1140 = vrot.lane.b32.xlu1 %v1210_v30, %s1446_s23  ;;  %1135 = vperm.xlu0 %1133, %v1210_v30  }
  0xee   : > { %v318_v35 = vpop.permute.xlu1 %317  ;;  %v316_v36 = vpop.permute.xlu0 %315 }
  0xef   : > { %v322_v39 = vadd.f32 %v318_v35, %v314_v37  ;;  %v321_v40 = vadd.f32 %v316_v36, %v313_v38 }
  0xf1   : > { %1145 = vrot.lane.b32.xlu0 %v1210_v30, %s1437_s5 }
  0xf2   : > { %v326_v41 = vpop.permute.xlu1 %325  ;;  %v324_v42 = vpop.permute.xlu0 %323 }
  0xf3   : > { %v330_v43 = vadd.f32 %v326_v41, %v322_v39  ;;  %v329_v44 = vadd.f32 %v324_v42, %v321_v40 }
  0xf5   : > { %v336_v45 = vmul.f32 0.11111111, %v330_v43  ;;  %v335_v46 = vmul.f32 0.11111111, %v329_v44 }
  0xf7   : > { %393 = vrot.lane.b32.xlu1 %v336_v45, %s1441_s10  ;;  %391 = vrot.lane.b32.xlu0 %v335_v46, %s1441_s10  ;;  %v1150_v47 = vpack.i.bf16 %v336_v45, %v335_v46  ;;  %v337_v48 = vsub.f32 %v333_v22, %v335_v46  ;;  %v338_v49 = vsub.f32 %v334_v21, %v336_v45  ;;  %v588_v51 = vrot.slane %v335_v46, 4 }
  0xf8   : > { %v589_v52 = vrot.slane %v336_v45, 4 }
  0xf9   : > { %v1175_v50 = vpack.i.bf16 %v338_v49, %v337_v48 }
  0xfa   : > { %v1200_v54 = vpack.i.bf16 %v589_v52, %v588_v51 }
  0xfb   : > { %1151 = vperm.xlu1 %1149, %v1150_v47   ;;  %450 = vrot.lane.b32.xlu0 %v337_v48, %s1441_s10 }
  0xff   : > { %1156 = vrot.lane.b32.xlu1 %v1150_v47, %s1446_s23  ;;  %1176 = vperm.xlu0 %1133, %v1175_v50  }
 0x100   : > { %1215 = vset.pattern.permute.xlu1 %v1447_v53 }
 0x103   : > { %1161 = vrot.lane.b32.xlu1 %v1150_v47, %s1437_s5  ;;  %1201 = vrot.lane.b32.xlu0 %v1200_v54, %s1441_s10 }
 0x107   : > { %1166 = vrot.lane.b32.xlu1 %v1150_v47, %s1443_s9 }
 0x10b   : > { %1171 = vrot.lane.b32.xlu1 %v1150_v47, %s1448_s18 }
 0x10f   : > { %452 = vrot.lane.b32.xlu1 %v338_v49, %s1441_s10 }
 0x113   : > { %1181 = vrot.lane.b32.xlu1 %v1175_v50, %s1446_s23  ;;  %s1453_s23 = smov [#allocation9]  }
 0x117   : > { %1186 = vrot.lane.b32.xlu1 %v1175_v50, %s1437_s5 }
 0x11b   : > { %1191 = vrot.lane.b32.xlu1 %v1175_v50, %s1443_s9 }
 0x11f   : > { %1196 = vrot.lane.b32.xlu1 %v1175_v50, %s1448_s18 }
 0x14f   : > { %v344_v55 = vpop.permute.xlu0 %343 }
 0x150   : > { %v349_v56 = vsub.f32 %v1670_v0, %v344_v55  ;;  %v1738_v0 = vand.u32 127, %v351_v62 }
 0x152   : > { %562 = vrot.lane.b32.xlu0 %v349_v56, %s1443_s9  ;;  %vm1741_vm1 = vcmp.eq.s32.totalorder %v1738_v0, %v355_v2  ;;  %vm353_vm5 = vcmp.eq.s32.totalorder %v1738_v0, 0 }
 0x153   : > { %v346_v57 = vpop.permute.xlu1 %345 }
 0x154   : > { %v350_v58 = vsub.f32 %v1675_v1, %v346_v57 }
 0x156   : > { %564 = vrot.lane.b32.xlu1 %v350_v58, %s1443_s9  ;;  %1211 = vrot.lane.b32.xlu0 %v1210_v30, %s1448_s18  ;;  %v1726_v59 = vpack.i.bf16 %v350_v58, %v349_v56  ;;  %s1346_s18 = sshll.u32 %s1453_s23, 4  ;;  %s1347_s18 = int_to_ptr.vmem [resolvable:$false] %s1346_s18 }
 0x157   : > { %p1349_p9 = scmp.lt.s32.totalorder %s1896_s17, %s1347_s18 }
 0x15a   : > { %1206 = vrot.lane.b32.xlu1 %v1210_v30, %s1443_s9  ;;  %1227 = vrot.lane.b32.xlu0 %v1726_v59, %s1441_s10 }
 0x15b   : > { %v509_v60 = vpop.permute.xlu1 %508  ;;  %v507_v61 = vpop.permute.xlu0 %506 }
 0x15c   : > { %v513_v12 = vsel %vm1741_vm1, %v509_v60, 0.0  ;;  %v512_v29 = vsel %vm1741_vm1, %v507_v61, 0.0 }
 0x15d   : > { %v517_v14 = vsel %vm399_vm2, %v513_v12, 0.0  ;;  %v514_v31 = vsel %vm399_vm2, %v512_v29, 0.0 }
 0x15e   : > { %1217 = vperm.xlu1 %1215, %v1726_v59  }
 0x15f   : > { %v1141_v1 = vpop.permute.xlu1 %1140 }
 0x160   : > { %v1143_v4 = vunpack.i.h.bf16 %v1141_v1  ;;  %v1142_v5 = vunpack.i.l.bf16 %v1141_v1 }
 0x162   : > { %1222 = vrot.lane.b32.xlu1 %v1726_v59, %s1449_s7  ;;  %s1348_s7 = scalar_lea.vmem %s1347_s18, 512 }
 0x166   : > { %1232 = vrot.lane.b32.xlu1 %v1726_v59, %s1445_s16  ;;  %s1342_s16 = scalar_lea.vmem %s1896_s17, 256 }
 0x167   : > { %p1343_p2 = scmp.ne.s32.totalorder %s1896_s17, %s1342_s16  ;;  %p1350_p10 = scmp.lt.s32.totalorder %s1348_s7, %s1342_s16 }
 0x169   : > { %v394_v13 = vpop.permute.xlu1 %393  ;;  %p1344_p3 = pnand %p1343_p2, %p1966_p5  ;;  %p1351_p12 = por %p1350_p10, %p1349_p9 }
 0x16a   : > { %v398_v33 = vsel %vm1741_vm1, %v394_v13, 0.0 }
 0x16b   : > { %v403_v43 = vsel %vm399_vm2, %v398_v33, 0.0  ;;  %p1345_p1 = pneg %p1344_p3 }
 0x16c   : > { %v1736_v63 = vpop.permute.xlu0 %1135 }
 0x16d   : > { %p1352_p0 = pnand %p1351_p12, %p1345_p1 }
 0x170   : > { %v1146_v3 = vpop.permute.xlu0 %1145 }
 0x171   : > { %v1148_v6 = vunpack.i.h.bf16 %v1146_v3  ;;  %v1147_v7 = vunpack.i.l.bf16 %v1146_v3 }
 0x173   : > { %v1746_v9 = vsel %vm371_vm0, %v1143_v4, %v1148_v6  ;;  %v1749_v10 = vsel %vm371_vm0, %v1142_v5, %v1147_v7 }
 0x174   : > { %v392_v11 = vpop.permute.xlu0 %391 }
 0x175   : > { %v397_v15 = vsel %vm1741_vm1, %v392_v11, 0.0 }
 0x176   : > { %v400_v18 = vsel %vm399_vm2, %v397_v15, 0.0 }
 0x178   : > { %v1756_v16 = vpop.permute.xlu0 %450 }
 0x179   : > { %518 = vadd.xlane.f32.xlu0 %v517_v14  ;;  %v456_v19 = vsel %vm1741_vm1, %v1756_v16, 0.0 }
 0x17a   : > { %v1152_v17 = vpop.permute.xlu1 %1151  ;;  %v458_v21 = vsel %vm399_vm2, %v456_v19, 0.0 }
 0x17b   : > { %v1154_v39 = vunpack.i.h.bf16 %v1152_v17  ;;  %v1153_v40 = vunpack.i.l.bf16 %v1152_v17 }
 0x17d   : > { %401 = vadd.xlane.f32.xlu0 %v400_v18 }
 0x17e   : > { %v1157_v20 = vpop.permute.xlu1 %1156  ;;  %v1177_v60 = vpop.permute.xlu0 %1176 }
 0x17f   : > { %v1159_v23 = vunpack.i.h.bf16 %v1157_v20  ;;  %v1158_v24 = vunpack.i.l.bf16 %v1157_v20  ;;  %v1179_v4 = vunpack.i.h.bf16 %v1177_v60  ;;  %v1178_v5 = vunpack.i.l.bf16 %v1177_v60 }
 0x181   : > { %459 = vadd.xlane.f32.xlu0 %v458_v21 }
 0x182   : > { %v1162_v22 = vpop.permute.xlu1 %1161  ;;  %v1202_v19 = vpop.permute.xlu0 %1201 }
 0x183   : > { %v1164_v25 = vunpack.i.h.bf16 %v1162_v22  ;;  %v1163_v26 = vunpack.i.l.bf16 %v1162_v22 }
 0x185   : > { %v1764_v27 = vsel %vm371_vm0, %v1158_v24, %v1163_v26  ;;  %v1767_v28 = vsel %vm371_vm0, %v1159_v23, %v1164_v25 }
 0x186   : > { %v1167_v30 = vpop.permute.xlu1 %1166 }
 0x187   : > { %v1169_v35 = vunpack.i.h.bf16 %v1167_v30  ;;  %v1168_v36 = vunpack.i.l.bf16 %v1167_v30 }
 0x18a   : > { %v1172_v34 = vpop.permute.xlu1 %1171  ;;  %515 = vadd.xlane.f32.xlu1 %v514_v31 }
 0x18b   : > { %v1174_v37 = vunpack.i.h.bf16 %v1172_v34  ;;  %v1173_v38 = vunpack.i.l.bf16 %v1172_v34  ;;  %v1138_v34 = vunpack.i.h.bf16 %v1736_v63 }
 0x18d   : > { %v387_v41 = vsel %vm386_vm3, %v1168_v36, %v1173_v38  ;;  %v388_v42 = vsel %vm386_vm3, %v1169_v35, %v1174_v37  ;;  %v1137_v35 = vunpack.i.l.bf16 %v1736_v63 }
 0x18e   : > { %v1779_v44 = vsel %vm1741_vm1, %v1153_v40, %v387_v41  ;;  %v1783_v45 = vsel %vm1741_vm1, %v1154_v39, %v388_v42  ;;  %v453_v46 = vpop.permute.xlu1 %452  ;;  %404 = vadd.xlane.f32.xlu1 %v403_v43 }
 0x18f   : > { %v457_v47 = vsel %vm1741_vm1, %v453_v46, 0.0 }
 0x190   : > { %v461_v48 = vsel %vm399_vm2, %v457_v47, 0.0 }
 0x191   : > { %462 = vadd.xlane.f32.xlu0 %v461_v48 }
 0x192   : > { %v1182_v49 = vpop.permute.xlu1 %1181 }
 0x193   : > { %v1184_v51 = vunpack.i.h.bf16 %v1182_v49  ;;  %v1183_v52 = vunpack.i.l.bf16 %v1182_v49 }
 0x196   : > { %v1187_v50 = vpop.permute.xlu1 %1186 }
 0x197   : > { %v1189_v54 = vunpack.i.h.bf16 %v1187_v50  ;;  %v1188_v55 = vunpack.i.l.bf16 %v1187_v50  ;;  %v1269_v50 = vld [vmem:[%s1664_s24] sm:$0xff]  }
 0x199   : > { %v1789_v56 = vsel %vm371_vm0, %v1183_v52, %v1188_v55  ;;  %v1792_v57 = vsel %vm371_vm0, %v1184_v51, %v1189_v54  ;;  %v1451_v51 = vmov 0.0  }
 0x19a   : > { %v1192_v58 = vpop.permute.xlu1 %1191  ;;  %1022 = vmatprep.subr.bf16.mxu0 %v1451_v51  ;;  %1032 = vmatprep.subr.bf16.mxu1 %v1451_v51 }
 0x19b   : > { %v1194_v62 = vunpack.i.h.bf16 %v1192_v58  ;;  %v1193_v1 = vunpack.i.l.bf16 %v1192_v58  ;;  %1023 = vmatpush3.bf16.msra.mxu0 %v1269_v50  ;;  %1033 = vmatpush3.bf16.msra.mxu1 %v1269_v50 }
 0x19c   : > { %1024 = vmatprep.subr.bf16.mxu0 %v1451_v51  ;;  %1034 = vmatprep.subr.bf16.mxu1 %v1451_v51 }
 0x19d   : > { %1028 = vmatprep.mubr.msk.bf16.mxu0 %vm1452_vm6, %v1451_v51  ;;  %1038 = vmatprep.mubr.msk.bf16.mxu1 %vm1452_vm6, %v1451_v51 }
 0x19e   : > { %v1197_v61 = vpop.permute.xlu1 %1196 }
 0x19f   : > { %v1199_v2 = vunpack.i.h.bf16 %v1197_v61  ;;  %v1198_v3 = vunpack.i.l.bf16 %v1197_v61 }
 0x1a1   : > { %v448_v6 = vsel %vm386_vm3, %v1193_v1, %v1198_v3  ;;  %v449_v7 = vsel %vm386_vm3, %v1194_v62, %v1199_v2  ;;  %v1204_v2 = vunpack.i.h.bf16 %v1202_v19  ;;  %v1203_v3 = vunpack.i.l.bf16 %v1202_v19 }
 0x1a2   : > { %v474_v11 = vsel %vm1741_vm1, %v1178_v5, %v448_v6  ;;  %v475_v12 = vsel %vm1741_vm1, %v1179_v4, %v449_v7 }
 0x1a3   : > { %v604_v13 = vrot.slane %v474_v11, 4  ;;  %v605_v14 = vrot.slane %v475_v12, 4 }
 0x1a5   : > { %v1802_v15 = vsel %vm628_vm4, %v1756_v16, %v604_v13  ;;  %v1805_v17 = vsel %vm628_vm4, %v453_v46, %v605_v14 }
 0x1a6   : > { %v1250_v18 = vpack.i.bf16 %v1805_v17, %v1802_v15 }
 0x1c4   : > { %v1809_v20 = vpop.permute.xlu0 %562 }
 0x1c5   : > { %v568_v21 = vsel %vm1741_vm1, %v1809_v20, 0.0 }
 0x1c6   : > { %v570_v22 = vsel %vm399_vm2, %v568_v21, 0.0 }
 0x1c7   : > { %571 = vadd.xlane.f32.xlu1 %v570_v22  ;;  %v1271_v22 = vld [vmem:[%s1664_s24 + $0x10] sm:$0xff]  }
 0x1c8   : > { %v1815_v23 = vpop.permute.xlu1 %564  ;;  %v1212_v24 = vpop.permute.xlu0 %1211 }
 0x1c9   : > { %v569_v16 = vsel %vm1741_vm1, %v1815_v23, 0.0  ;;  %v1214_v29 = vunpack.i.h.bf16 %v1212_v24  ;;  %v1213_v30 = vunpack.i.l.bf16 %v1212_v24 }
 0x1ca   : > { %v573_v25 = vsel %vm399_vm2, %v569_v16, 0.0 }
 0x1cb   : > { %574 = vadd.xlane.f32.xlu0 %v573_v25 }
 0x1cc   : > { %v1207_v26 = vpop.permute.xlu1 %1206  ;;  %v1228_v41 = vpop.permute.xlu0 %1227 }
 0x1cd   : > { %v1209_v31 = vunpack.i.h.bf16 %v1207_v26  ;;  %v1208_v33 = vunpack.i.l.bf16 %v1207_v26  ;;  %v1230_v63 = vunpack.i.h.bf16 %v1228_v41  ;;  %v1229_v43 = vunpack.i.l.bf16 %v1228_v41 }
 0x1cf   : > { %v504_v36 = vsel %vm386_vm3, %v1208_v33, %v1213_v30  ;;  %v505_v37 = vsel %vm386_vm3, %v1209_v31, %v1214_v29 }
 0x1d0   : > { %v530_v38 = vsel %vm1741_vm1, %v1137_v35, %v504_v36  ;;  %v1829_v39 = vsel %vm1741_vm1, %v1138_v34, %v505_v37 }
 0x1d8   : > { %1242 = vrot.lane.b32.xlu1 %v1706_v32, %s1441_s10  ;;  %s1002_s10 = sshll.u32 %s1422_s28, 8  ;;  %s842_s28 = scalar_lea.sflag [#allocation6], %s1654_s21 }
 0x1d9   : > { %s1901_s30 = scalar_lea.hbm %s1953_s4, %s1002_s10 }
 0x1dd   : > { %v1833_v40 = vpop.permute.xlu1 %1217 }
 0x1de   : > { %v1220_v36 = vunpack.i.h.bf16 %v1833_v40  ;;  %v1219_v37 = vunpack.i.l.bf16 %v1833_v40 }
 0x1e1   : > { %v1223_v42 = vpop.permute.xlu1 %1222  ;;  %1237 = vrot.lane.b32.xlu0 %v1726_v59, %s1450_s14 }
 0x1e2   : > { %v1225_v46 = vunpack.i.h.bf16 %v1223_v42  ;;  %v1224_v47 = vunpack.i.l.bf16 %v1223_v42 }
 0x1e4   : > { %v546_v48 = vsel %vm371_vm0, %v1224_v47, %v1229_v43  ;;  %v547_v49 = vsel %vm371_vm0, %v1225_v46, %v1230_v63 }
 0x1e5   : > { %v1233_v61 = vpop.permute.xlu1 %1232 }
 0x1e6   : > { %v1235_v26 = vunpack.i.h.bf16 %v1233_v61  ;;  %v1234_v33 = vunpack.i.l.bf16 %v1233_v61 }
 0x206   : > { %v519_v32 = vpop.xlane.xlu0 %518 }
 0x207   : > { %v521_v59 = vsel %vm353_vm5, %v519_v32, %v1746_v9 }
 0x20a   : > { %v402_v52 = vpop.xlane.xlu0 %401 }
 0x20b   : > { %v408_v9 = vsel %vm353_vm5, %v402_v52, %v1764_v27 }
 0x20e   : > { %v460_v54 = vpop.xlane.xlu0 %459 }
 0x20f   : > { %v464_v55 = vsel %vm353_vm5, %v460_v54, %v1789_v56 }
 0x210   : > { %v598_v58 = vrot.slane %v464_v55, 4 }
 0x212   : > { %v631_v60 = vsel %vm628_vm4, %v1779_v44, %v598_v58  ;;  %v629_v44 = vsel %vm628_vm4, %v408_v9, %v1203_v3 }
 0x217   : > { %v516_v62 = vpop.xlane.xlu1 %515 }
 0x218   : > { %v520_v1 = vsel %vm353_vm5, %v516_v62, %v1749_v10 }
 0x21b   : > { %v405_v4 = vpop.xlane.xlu1 %404 }
 0x21c   : > { %v409_v56 = vsel %vm353_vm5, %v405_v4, %v1767_v28  ;;  %v1270_v28 = vld [vmem:[%s1664_s24 + $0x8] sm:$0xff]  }
 0x21d   : > { %v630_v5 = vsel %vm628_vm4, %v409_v56, %v1204_v2  ;;  %1025 = vmatpush3.bf16.msra.mxu0 %v1270_v28  ;;  %1035 = vmatpush3.bf16.msra.mxu1 %v1270_v28 }
 0x21e   : > { %v463_v6 = vpop.xlane.xlu0 %462  ;;  %v1246_v7 = vpack.i.bf16 %v630_v5, %v629_v44  ;;  %1026 = vmatprep.subr.bf16.mxu0 %v1451_v51  ;;  %1036 = vmatprep.subr.bf16.mxu1 %v1451_v51 }
 0x21f   : > { %v465_v10 = vsel %vm353_vm5, %v463_v6, %v1792_v57 }
 0x220   : > { %v599_v11 = vrot.slane %v465_v10, 4  ;;  %1247 = vxpose.xlu0.b32.start [1/6] (short) (narrow) %v1246_v7, 16 }
 0x221   : > { %1027 = vmatpush3.bf16.msra.mxu0 %v1271_v22  ;;  %1037 = vmatpush3.bf16.msra.mxu1 %v1271_v22 }
 0x222   : > { %v632_v27 = vsel %vm628_vm4, %v1783_v45, %v599_v11 }
 0x223   : > { %v1248_v12 = vpack.i.bf16 %v632_v27, %v631_v60 }
 0x225   : > { %1249 = vxpose.xlu0.b32.cont [2/6] (short) (narrow) %v1248_v12, 16 }
 0x229   : > { %1251 = vxpose.xlu0.b32.cont [3/6] (short) (narrow) %v1250_v18, 16 }
 0x254   : > { %v572_v13 = vpop.xlane.xlu1 %571 }
 0x255   : > { %v576_v14 = vsel %vm353_vm5, %v572_v13, %v546_v48 }
 0x256   : > { %v618_v57 = vrot.slane %v576_v14, 4 }
 0x258   : > { %v637_v19 = vsel %vm628_vm4, %v530_v38, %v618_v57  ;;  %v1243_v21 = vpop.permute.xlu1 %1242  ;;  %v575_v45 = vpop.xlane.xlu0 %574 }
 0x259   : > { %v1245_v16 = vunpack.i.h.bf16 %v1243_v21  ;;  %v1244_v24 = vunpack.i.l.bf16 %v1243_v21  ;;  %v577_v15 = vsel %vm353_vm5, %v575_v45, %v547_v49 }
 0x25a   : > { %v619_v17 = vrot.slane %v577_v15, 4 }
 0x25b   : > { %v636_v18 = vsel %vm628_vm4, %v521_v59, %v1245_v16  ;;  %v635_v25 = vsel %vm628_vm4, %v520_v1, %v1244_v24 }
 0x25c   : > { %v1252_v29 = vpack.i.bf16 %v636_v18, %v635_v25  ;;  %v638_v30 = vsel %vm628_vm4, %v1829_v39, %v619_v17  ;;  %v1238_v31 = vpop.permute.xlu0 %1237 }
 0x25d   : > { %v1240_v34 = vunpack.i.h.bf16 %v1238_v31  ;;  %v1239_v0 = vunpack.i.l.bf16 %v1238_v31  ;;  %v1254_v35 = vpack.i.bf16 %v638_v30, %v637_v19 }
 0x25e   : > { %1253 = vxpose.xlu0.b32.cont [4/6] (short) (narrow) %v1252_v29, 16 }
 0x25f   : > { %v561_v38 = vsel %vm386_vm3, %v1235_v26, %v1240_v34  ;;  %v560_v41 = vsel %vm386_vm3, %v1234_v33, %v1239_v0 }
 0x260   : > { %v587_v42 = vsel %vm1741_vm1, %v1220_v36, %v561_v38  ;;  %v586_v39 = vsel %vm1741_vm1, %v1219_v37, %v560_v41 }
 0x261   : > { %v625_v63 = vrot.slane %v587_v42, 4  ;;  %v624_v43 = vrot.slane %v586_v39, 4 }
 0x262   : > { %1255 = vxpose.xlu0.b32.cont [5/6] (short) (narrow) %v1254_v35, 16 }
 0x263   : > { %v639_v46 = vsel %vm628_vm4, %v1809_v20, %v624_v43  ;;  %v640_v40 = vsel %vm628_vm4, %v1815_v23, %v625_v63  ;;  %v980_v20 = vld [vmem:[%s1952_s3] ss:$0 sm:$0xff] }
 0x264   : > { %v1256_v47 = vpack.i.bf16 %v640_v40, %v639_v46 }
 0x266   : > { %1257 = vxpose.xlu0.b32.end [6/6] (short) (narrow) %v1256_v47, 16 }
 0x28f   : > { %1268 = vset.pattern.permute.xlu0 %v1447_v53 }
 0x2d2   : > { %v1258_v48 = vpop.trf.xlu0 }
 0x2d3   : > { %v1262_v49 = vunpack.i.h.bf16 %v1258_v48  ;;  %v1259_v50 = vunpack.i.l.bf16 %v1258_v48 }
 0x2d6   : > { %v1263_v51 = vpop.trf.xlu0 }
 0x2d7   : > { %v1267_v8 = vunpack.i.h.bf16 %v1263_v51  ;;  %v1264_v32 = vunpack.i.l.bf16 %v1263_v51 }
 0x2d9   : > { %v673_v59 = vpack.c.bf16 %v1264_v32, %v1259_v50  ;;  %v785_v52 = vpack.c.bf16 %v1267_v8, %v1262_v49 }
 0x2db   : > { %1029 = vmatmul.mubr.msk.bf16.vlgmr.msra.gmra.mrb[0].mxu0 %vm698_vm7, %v673_v59  ;;  %1039 = vmatmul.mubr.msk.bf16.vlgmr.msra.gmra.mrb[0].mxu1 %vm698_vm7, %v785_v52 }
 0x3ae   : > { %v736_v23 = vpop.f32.mrb[0].mxu0  ;;  %v823_v54 = vpop.f32.mrb[0].mxu1 }
 0x3af   : > { %v1030_v53 = vpop.f32.mrb[1].mxu0  ;;  %v1040_v55 = vpop.f32.mrb[1].mxu1  ;;  %v737_v61 = vadd.f32 %v980_v20, %v736_v23  ;;  %v824_v62 = vadd.f32 %v980_v20, %v823_v54 }
 0x3b0   : > { %v739_v58 = vpop.f32.mrb[2].mxu0  ;;  %v826_v60 = vpop.f32.mrb[2].mxu1 }
 0x3b1   : > { %v740_v1 = vadd.f32 %v980_v20, %v739_v58  ;;  %v827_v9 = vadd.f32 %v980_v20, %v826_v60  ;;  %v1031_v2 = vpop.f32.mrb[3].mxu0  ;;  %v1041_v3 = vpop.f32.mrb[3].mxu1 }
 0x3b3   : > { %v1006_v4 = vpack.c.bf16 %v740_v1, %v737_v61  ;;  %v1011_v56 = vpack.c.bf16 %v827_v9, %v824_v62 }
 0x3b5   : > { %1007 = vst [vmem:[%s251_s15] sm:$0xff] %v1006_v4   ;;  %1013 = vst [vmem:[%s251_s15 + $0x8] sm:$0xff] %v1011_v56  }
 0x3b6   : > { %1355 = shalt.err (!%p1352_p0)
}
 0x3b7   : > { %s1356_s8 = scalar_lea.hbm %s1901_s30, 256  ;;  %s1360_s20 = scalar_lea.hbm %s1953_s4, 1024 }
 0x3b8   : > { %p1357_p8 = scmp.ne.s32.totalorder %s1901_s30, %s1356_s8  ;;  %p1361_p6 = scmp.lt.u32.totalorder %s1901_s30, %s1953_s4 }
 0x3b9   : > { %p1362_p7 = scmp.lt.u32.totalorder %s1360_s20, %s1356_s8  ;;  %p1364_p2 = scmp.lt.u32.totalorder %s1356_s8, %s1901_s30 }
 0x3ba   : > { %p1358_p13 = pnand %p1357_p8, %p1966_p5 }
 0x3bb   : > { %p1363_p11 = por %p1362_p7, %p1361_p6 }
 0x3bc   : > { %p1359_p4 = pneg %p1358_p13 }
 0x3bd   : > { %p1365_p3 = por %p1364_p2, %p1363_p11 }
 0x3bf   : > { %p1366_p1 = pnand %p1365_p3, %p1359_p4 }
 0x3c1   : > { %1369 = shalt.err (!%p1366_p1)
}
 0x3c2   : > { %s1454_s15 = smov 64   ;;  %s1455_s10 = smov 4  }
 0x3c3   : > { %1049 = dma.vmem_to_hbm [thread:$0]  (%p1966_p5), %s1896_s17, 256, %s1901_s30, %s842_s28, %s1454_s15, %s1454_s15, %s1455_s10  }
 0x3c4 PF: > { %p1063_p9 = scmp.ge.s32.totalorder %s1430_s0, 2  ;;  %s873_s19 = sand.u32 1, %s1410_s25  }
 0x3c5   : > { %p1967_p10 = scmp.ne.s32.totalorder %s1959_s13, 0  ;;  %s874_s9 = scalar_lea.sflag [#allocation6], %s873_s19 }
 0x3c7   : > { %p1059_p12 = pnand %p1063_p9, %p1967_p10 }
 0x3c9   : > { %1405 = dma.done.wait (!%p1059_p12), %s874_s9, 256  }
 0x3ca   : > { %1407 = vsyncadd (!%p1059_p12), %s874_s9, 4294967040  ;;  %s27_s0 = sadd.s32 1, %s1430_s0   ;;  %s1968_s25 = smov %s1414_s26 }
 0x3cb   : > { %p24_p0 = scmp.ge.s32.totalorder %s27_s0, 6   ;;  %s1969_s26 = smov %s1418_s27 }
 0x3cc   : > { %s1970_s27 = smov %s1549_s12  ;;  %s1971_s28 = smov %s1426_s29 }
 0x3cd   : > { %s1972_s29 = smov %s1974_s6  ;;  %26 = sbr.rel (!%p24_p0) target bundleno = 20 (0x14), region = 91 }
 0x3d4   :  { %879 = vsyncpa [#allocation5], 1 }
 0x3d5   :  { %881 = vsyncpa [#allocation5 + $0x1], 1 }
 0x3d6   :  { %882 = vsyncpa [#allocation8], 1 }
 0x3d7   :  { %884 = vsyncpa [#allocation8 + $0x1], 1 }
 0x3d8   :  { %885 = vsyncpa [#allocation6], 1 }
 0x3d9   :  { %887 = vsyncpa [#allocation6 + $0x1], 1 }

</bundles_post_ra>
